<compile_context>
chip_gen: v6e
topology: v6e:2x2x1
jax: 0.10.0
libtpu: 0.0.40
codegen_flags: <defaults>
</compile_context>

<pallas_src>
import math

import numpy as np
import jax
import jax.numpy as jnp
from jax.experimental import pallas as pl
from jax.experimental.pallas import tpu as pltpu

N_HEAD = 8
N_FEAT = 16  # n_query = n_key = n_value = 16
BATCH = 8    # fc2 (16, 16) applied to a last dim of 2*batch -> batch must be 8

# Pair-swap permutation on the 16 projected features: feature f = j*8 + 2*h' + i maps
# to f ^ 1 (the "other row" of each 2x2 head matrix).  Folding P_SWAP @ W into extra
# projection rows gives that component for free on the MXU (no in-kernel shuffles).
_P_SWAP = np.zeros((N_FEAT, N_FEAT), dtype=np.float32)
_P_SWAP[np.arange(N_FEAT), np.arange(N_FEAT) ^ 1] = 1.0


# ---------------------------------------------------------------------------
# Fused Pallas kernel
# ---------------------------------------------------------------------------
def _fused_kernel(x_ref, w_ref, r_ref, o_ref):
    """One-shot fused forward.

    x_ref : (32, B*S)   activation slab; rows 0:16 = xq features, 16:32 = xv features,
                        columns = (b, s)
    w_ref : (64, 32)    blockdiag([Wq ; P_swap@Wq], [Wv ; P_swap@Wv])  (torch (out,in))
    r_ref : (2*B*S, S*16)  precomputed fc2 + cross-batch-concat reorg weight
    o_ref : (8, S*16)   output slab  Y[2h'+i, s*16 + f]  (lane-dense, unmasked store)
    """
    # Single MXU matmul: q-projection, v-projection and their pair-swapped copies,
    # all as sublane-aligned row groups of one (64, B*S) result.
    zz = jnp.dot(w_ref[...], x_ref[...], preferred_element_type=jnp.float32)

    qa, qb, qa_s, qb_s = zz[0:8], zz[8:16], zz[16:24], zz[24:32]
    va, vb, va_s, vb_s = zz[32:40], zz[40:48], zz[48:56], zz[56:64]

    scale = 1.0 / math.sqrt(2.0)
    # Per column (= one (b, s)) and per row (= one (head, i)): Q @ Q^T is symmetric,
    # so only the diagonal and one off-diagonal score are needed (pure VPU math).
    s_diag = (qa * qa + qb * qb) * scale        # scores[i, i]
    s_off = (qa * qa_s + qb * qb_s) * scale     # scores[i, 1-i] == scores[1-i, i]

    m = jnp.maximum(s_diag, s_off)
    e_d = jnp.exp(s_diag - m)
    e_o = jnp.exp(s_off - m)
    # Exact reciprocal kept: approx=True would loosen validation tolerance for no
    # measurable gain at this launch-bound size.
    inv = 1.0 / (e_d + e_o)
    a_d = e_d * inv
    a_o = e_o * inv

    out0 = a_d * va + a_o * va_s    # (8, B*S): O[i, 0] at row 2h'+i, col (b, s)
    out1 = a_d * vb + a_o * vb_s    # (8, B*S): O[i, 1]

    # fc2 + cross-batch concat reorg fused into ONE K=128 MXU dot against the
    # precomputed R = [R0 ; R1]; lane-concat of two half-width vregs is a cheap select.
    out_cat = jnp.concatenate([out0, out1], axis=-1)          # (8, 2*B*S)
    o_ref[...] = jnp.dot(out_cat, r_ref[...],
                         preferred_element_type=jnp.float32)  # (8, S*16)


# ---------------------------------------------------------------------------
# Parameter init + one-time prep (hoisted out of the per-call forward path)
# ---------------------------------------------------------------------------
def init_params(key):
    ks = jax.random.split(key, 4)
    bound = 1.0 / math.sqrt(N_FEAT)
    mk = lambda k: jax.random.uniform(k, (N_FEAT, N_FEAT), jnp.float32, -bound, bound)
    return {"w_q": mk(ks[0]), "w_k": mk(ks[1]), "w_v": mk(ks[2]), "fc2": mk(ks[3])}


def prepare_params(params, seq_len):
    """One-time prep: run once per parameter set, NOT per forward call."""
    b = BATCH
    s = seq_len
    assert s % 2 == 0
    rows = b * s
    out_cols = s * N_FEAT

    p_swap = jnp.asarray(_P_SWAP)
    wq = params["w_q"].astype(jnp.float32)
    wv = params["w_v"].astype(jnp.float32)
    wq_big = jnp.concatenate([wq, p_swap @ wq], axis=0)      # (32, 16)
    wv_big = jnp.concatenate([wv, p_swap @ wv], axis=0)      # (32, 16)
    zeros = jnp.zeros((2 * N_FEAT, N_FEAT), jnp.float32)
    w_bd = jnp.concatenate(
        [jnp.concatenate([wq_big, zeros], axis=1),
         jnp.concatenate([zeros, wv_big], axis=1)], axis=0)  # (64, 32) block-diagonal

    # R_j[b*S + s, s'*16 + f] = (s == s') * fc2[f, 2b + j]
    # -> out_j @ R_j implements both the "concat batch slices along last dim" reorg and
    #    the fc2 matmul; stacking R0/R1 lets the kernel do it in one K=128 MXU dot.
    fc2 = params["fc2"].astype(jnp.float32)
    eye_s = jnp.eye(s, dtype=jnp.float32)
    g0 = fc2[:, 0::2].T  # (B, 16): g0[b, f] = fc2[f, 2b]
    g1 = fc2[:, 1::2].T  # (B, 16): g1[b, f] = fc2[f, 2b+1]
    r0 = jnp.einsum("bf,st->bstf", g0, eye_s).reshape(rows, out_cols)
    r1 = jnp.einsum("bf,st->bstf", g1, eye_s).reshape(rows, out_cols)
    r = jnp.concatenate([r0, r1], axis=0)                    # (2*rows, out_cols)

    return {"w": w_bd, "r": r}


# ---------------------------------------------------------------------------
# Per-call forward (jitted): tiny activation prep + one pallas_call
# ---------------------------------------------------------------------------
@jax.jit
def model_forward(xq, xk, xv, prepped):
    """Forward pass of the torch Model (inference semantics)."""
    del xk  # `k = w_k(xk)` never feeds the output in the torch module -> dead.
    b, s, d = xq.shape
    assert d == N_FEAT and s % 2 == 0
    assert b == BATCH, "fc2 (16,16) requires batch == 8 (original module constraint)"
    rows = b * s
    out_cols = s * N_FEAT
    assert prepped["r"].shape == (2 * rows, out_cols), "prepared params built for a different seq_len"

    # Lane-dense (features, rows) activation slab: one tiny XLA fusion per call.
    x_t = jnp.concatenate(
        [xq.reshape(rows, d), xv.reshape(rows, d)], axis=1).T.astype(jnp.float32)  # (32, rows)

    y_slab = pl.pallas_call(
        _fused_kernel,
        out_shape=jax.ShapeDtypeStruct((8, out_cols), jnp.float32),
        grid=(1,),  # whole problem (<100 KB) in one step; too small to shard across TCs
        in_specs=[
            pl.BlockSpec((2 * d, rows), lambda i: (0, 0)),
            pl.BlockSpec((4 * d, 2 * d), lambda i: (0, 0)),
            pl.BlockSpec((2 * rows, out_cols), lambda i: (0, 0)),
        ],
        out_specs=pl.BlockSpec((8, out_cols), lambda i: (0, 0)),
        compiler_params=pltpu.CompilerParams(dimension_semantics=("arbitrary",)),
    )(x_t, prepped["w"], prepped["r"])

    # y_slab[2h'+i, (2m+s0)*16 + f]  ->  y[m, h = 4*s0 + h', i, f]   (4 KB, fused by XLA)
    y = (y_slab.reshape(N_HEAD // 2, 2, s // 2, 2, N_FEAT)
               .transpose(2, 3, 0, 1, 4)
               .reshape(s // 2, N_HEAD, 2, N_FEAT))
    # dropout(p=0.3): identity at inference.
    return y


# ---------------------------------------------------------------------------
# Pure-JAX reference (mirrors the torch semantics) for validation
# ---------------------------------------------------------------------------
def _split(x, n_head):
    b, s, d = x.shape
    n_chunks = d // n_head  # = 2
    chunks = [x[..., i * n_head:(i + 1) * n_head] for i in range(n_chunks)]
    stacked = [c.reshape(b, -1, n_head, d // n_head) for c in chunks]  # (B, S//2, H, 2)
    return jnp.stack(stacked, axis=-1)  # (B, S//2, H, 2, 2)


def reference_forward(xq, xk, xv, params):
    hi = jax.lax.Precision.HIGHEST
    q = jnp.matmul(xq, params["w_q"].T, precision=hi)
    v = jnp.matmul(xv, params["w_v"].T, precision=hi)
    sq = _split(q, N_HEAD)
    sv = _split(v, N_HEAD)
    scores = jnp.einsum("bmhij,bmhkj->bmhik", sq, sq, precision=hi) / math.sqrt(2.0)
    a = jax.nn.softmax(scores, axis=-1)
    o = jnp.einsum("bmhik,bmhkj->bmhij", a, sv, precision=hi)
    b = xq.shape[0]
    concated = jnp.transpose(o, (1, 2, 3, 0, 4)).reshape(o.shape[1], o.shape[2], 2, 2 * b)
    return jnp.matmul(concated, params["fc2"].T, precision=hi)


if __name__ == "__main__":
    key = jax.random.PRNGKey(0)
    kp, k1, k2, k3 = jax.random.split(key, 4)
    params = init_params(kp)

    B, S, D = BATCH, 8, N_FEAT  # batch must be 8 so fc2's (16,16) weight matches 2*B
    xq = jax.random.normal(k1, (B, S, D), jnp.float32)
    xk = jax.random.normal(k2, (B, S, D), jnp.float32)
    xv = jax.random.normal(k3, (B, S, D), jnp.float32)

    # One-time parameter prep (kept out of the per-call forward path).
    prepped = jax.tree_util.tree_map(jax.block_until_ready, prepare_params(params, S))

    out = jax.block_until_ready(model_forward(xq, xk, xv, prepped))
    ref = jax.block_until_ready(reference_forward(xq, xk, xv, params))

    assert out.shape == (S // 2, N_HEAD, 2, N_FEAT), out.shape
    assert jnp.allclose(out, ref, rtol=1e-5, atol=1e-5), float(jnp.max(jnp.abs(out - ref)))
    print("KERNEL_OK")
</pallas_src>

<mosaic_0001>
module attributes {stable_mosaic.version = 11 : i64} {
  func.func @_fused_kernel(%arg0: i32, %arg1: memref<32x64xf32, #tpu.memory_space<vmem>>, %arg2: memref<64x32xf32, #tpu.memory_space<vmem>>, %arg3: memref<128x128xf32, #tpu.memory_space<vmem>>, %arg4: memref<8x128xf32, #tpu.memory_space<vmem>>) attributes {dimension_semantics = [#tpu.dimension_semantics<arbitrary>], iteration_bounds = array<i64: 1>, scalar_prefetch = 0 : i64, scratch_operands = 0 : i64, tpu.core_type = #tpu.core_type<tc>, window_params = [{pipeline_mode = #tpu.pipeline_mode<synchronous>, transform_indices = @transform_0, window_bounds = array<i64: 32, 64>}, {pipeline_mode = #tpu.pipeline_mode<synchronous>, transform_indices = @transform_1, window_bounds = array<i64: 64, 32>}, {pipeline_mode = #tpu.pipeline_mode<synchronous>, transform_indices = @transform_2, window_bounds = array<i64: 128, 128>}, {pipeline_mode = #tpu.pipeline_mode<synchronous>, transform_indices = @transform_3, window_bounds = array<i64: 8, 128>}]} {
    %c0 = arith.constant 0 : index
    %c0_0 = arith.constant 0 : index
    %0 = vector.load %arg2[%c0, %c0_0] : memref<64x32xf32, #tpu.memory_space<vmem>>, vector<64x32xf32>
    %c0_1 = arith.constant 0 : index
    %c0_2 = arith.constant 0 : index
    %1 = vector.load %arg1[%c0_1, %c0_2] : memref<32x64xf32, #tpu.memory_space<vmem>>, vector<32x64xf32>
    %cst = arith.constant dense<0.000000e+00> : vector<64x64xf32>
    %2 = tpu.matmul %0, %1, %cst {dimension_numbers = #tpu.dot_dimension_numbers<[1], [0], [0], [1], [0, 0, 1, 1], [], []>} : vector<64x32xf32>, vector<32x64xf32>, vector<64x64xf32> -> vector<64x64xf32>
    %3 = vector.extract_strided_slice %2 {offsets = [0, 0], sizes = [8, 64], strides = [1, 1]} : vector<64x64xf32> to vector<8x64xf32>
    %4 = vector.extract_strided_slice %2 {offsets = [8, 0], sizes = [8, 64], strides = [1, 1]} : vector<64x64xf32> to vector<8x64xf32>
    %5 = vector.extract_strided_slice %2 {offsets = [16, 0], sizes = [8, 64], strides = [1, 1]} : vector<64x64xf32> to vector<8x64xf32>
    %6 = vector.extract_strided_slice %2 {offsets = [24, 0], sizes = [8, 64], strides = [1, 1]} : vector<64x64xf32> to vector<8x64xf32>
    %7 = vector.extract_strided_slice %2 {offsets = [32, 0], sizes = [8, 64], strides = [1, 1]} : vector<64x64xf32> to vector<8x64xf32>
    %8 = vector.extract_strided_slice %2 {offsets = [40, 0], sizes = [8, 64], strides = [1, 1]} : vector<64x64xf32> to vector<8x64xf32>
    %9 = vector.extract_strided_slice %2 {offsets = [48, 0], sizes = [8, 64], strides = [1, 1]} : vector<64x64xf32> to vector<8x64xf32>
    %10 = vector.extract_strided_slice %2 {offsets = [56, 0], sizes = [8, 64], strides = [1, 1]} : vector<64x64xf32> to vector<8x64xf32>
    %11 = arith.mulf %3, %3 : vector<8x64xf32>
    %12 = arith.mulf %4, %4 : vector<8x64xf32>
    %13 = arith.addf %11, %12 : vector<8x64xf32>
    %cst_3 = arith.constant 0.707106769 : f32
    %14 = vector.broadcast %cst_3 : f32 to vector<8x64xf32>
    %15 = arith.mulf %13, %14 : vector<8x64xf32>
    %16 = arith.mulf %3, %5 : vector<8x64xf32>
    %17 = arith.mulf %4, %6 : vector<8x64xf32>
    %18 = arith.addf %16, %17 : vector<8x64xf32>
    %cst_4 = arith.constant 0.707106769 : f32
    %19 = vector.broadcast %cst_4 : f32 to vector<8x64xf32>
    %20 = arith.mulf %18, %19 : vector<8x64xf32>
    %21 = arith.maximumf %15, %20 : vector<8x64xf32>
    %22 = arith.subf %15, %21 : vector<8x64xf32>
    %23 = math.exp %22 : vector<8x64xf32>
    %24 = arith.subf %20, %21 : vector<8x64xf32>
    %25 = math.exp %24 : vector<8x64xf32>
    %26 = arith.addf %23, %25 : vector<8x64xf32>
    %cst_5 = arith.constant 1.000000e+00 : f32
    %27 = vector.broadcast %cst_5 : f32 to vector<8x64xf32>
    %28 = arith.divf %27, %26 : vector<8x64xf32>
    %29 = arith.mulf %23, %28 : vector<8x64xf32>
    %30 = arith.mulf %25, %28 : vector<8x64xf32>
    %31 = arith.mulf %29, %7 : vector<8x64xf32>
    %32 = arith.mulf %30, %9 : vector<8x64xf32>
    %33 = arith.addf %31, %32 : vector<8x64xf32>
    %34 = arith.mulf %29, %8 : vector<8x64xf32>
    %35 = arith.mulf %30, %10 : vector<8x64xf32>
    %36 = arith.addf %34, %35 : vector<8x64xf32>
    %37 = tpu.concatenate %33, %36 in 1 : vector<8x64xf32>, vector<8x64xf32> -> vector<8x128xf32>
    %c0_6 = arith.constant 0 : index
    %c0_7 = arith.constant 0 : index
    %38 = vector.load %arg3[%c0_6, %c0_7] : memref<128x128xf32, #tpu.memory_space<vmem>>, vector<128x128xf32>
    %cst_8 = arith.constant dense<0.000000e+00> : vector<8x128xf32>
    %39 = tpu.matmul %37, %38, %cst_8 {dimension_numbers = #tpu.dot_dimension_numbers<[1], [0], [0], [1], [0, 0, 1, 1], [], []>} : vector<8x128xf32>, vector<128x128xf32>, vector<8x128xf32> -> vector<8x128xf32>
    %c0_9 = arith.constant 0 : index
    %c0_10 = arith.constant 0 : index
    %40 = vector.load %arg4[%c0_9, %c0_10] : memref<8x128xf32, #tpu.memory_space<vmem>>, vector<8x128xf32>
    tpu.vector_store %arg4[%c0_9, %c0_10], %39 {strides = array<i32>} : memref<8x128xf32, #tpu.memory_space<vmem>>, vector<8x128xf32>,
    return
  }
  func.func @transform_0(%arg0: i32) -> (i32, i32) {
    %c0_i32 = arith.constant 0 : i32
    %c0_i32_0 = arith.constant 0 : i32
    %c0_i32_1 = arith.constant 0 : i32
    return %c0_i32, %c0_i32_0 : i32, i32
  }
  func.func @transform_1(%arg0: i32) -> (i32, i32) {
    %c0_i32 = arith.constant 0 : i32
    %c0_i32_0 = arith.constant 0 : i32
    %c0_i32_1 = arith.constant 0 : i32
    return %c0_i32, %c0_i32_0 : i32, i32
  }
  func.func @transform_2(%arg0: i32) -> (i32, i32) {
    %c0_i32 = arith.constant 0 : i32
    %c0_i32_0 = arith.constant 0 : i32
    %c0_i32_1 = arith.constant 0 : i32
    return %c0_i32, %c0_i32_0 : i32, i32
  }
  func.func @transform_3(%arg0: i32) -> (i32, i32) {
    %c0_i32 = arith.constant 0 : i32
    %c0_i32_0 = arith.constant 0 : i32
    %c0_i32_1 = arith.constant 0 : i32
    return %c0_i32, %c0_i32_0 : i32, i32
  }
}

</mosaic_0001>

<bundles_post_ra>
// kernel: model_forward.1
= control target key start
LH: loop header
LB: loop body
LE: loop exit
PB: predicated region body
PF: predicated region fallthrough
CT: control target
= control target key end

     0   :  { %vm26_vm0 = vcmask 261120   ;;  %v380_v12 = vmov 0.0   ;;  %vm381_vm1 = vmmov 0   ;;  %s382_s11 = smov 64   ;;  %vm186_vm2 = vcmask 523264   ;;  %s515_s0 = inlined_call_operand.vmem [shape: f32[32,64], index: 0, kind: input, shape index: {}]   ;;  %s516_s1 = inlined_call_operand.vmem [shape: f32[64,32], index: 1, kind: input, shape index: {}]   ;;  %s517_s2 = inlined_call_operand.vmem [shape: f32[128,128], index: 2, kind: input, shape index: {}]   ;;  %s518_s3 = inlined_call_operand.vmem [shape: f32[8,128], index: 3, kind: output, shape index: {}]  }
   0x1   :  { %v25_v0 = vld [vmem:[%s515_s0 + $0x18] sm:$0xff]  ;;  %v24_v1 = vld [vmem:[%s515_s0 + $0x10] sm:$0xff]  ;;  %v14_v2 = vld [vmem:[%s516_s1] sm:$0xff]  ;;  %336 = vmatprep.subr.mxu1 %v380_v12  ;;  %368 = vmatprep.mubr.msk.f32.mxu1 %vm381_vm1, %v380_v12 }
   0x2   :  { %316 = vmatprep.subr.mxu0 %v25_v0  ;;  %v23_v3 = vld [vmem:[%s515_s0 + $0x8] sm:$0xff]  ;;  %324 = vmatprep.mubr.msk.f32.mxu0 %vm26_vm0, %v14_v2  ;;  %v22_v4 = vld [vmem:[%s515_s0] sm:$0xff]  ;;  %v16_v6 = vld [vmem:[%s516_s1 + $0x10] sm:$0xff] }
   0x3   :  { %317 = vmatpush3.msra.mxu0 %v25_v0  ;;  %v15_v5 = vld [vmem:[%s516_s1 + $0x8] sm:$0xff]  ;;  %v17_v7 = vld [vmem:[%s516_s1 + $0x18] sm:$0xff]  ;;  %v18_v8 = vld [vmem:[%s516_s1 + $0x20] sm:$0xff] }
   0x4   :  { %318 = vmatprep.subr.mxu0 %v24_v1  ;;  %v19_v9 = vld [vmem:[%s516_s1 + $0x28] sm:$0xff]  ;;  %v20_v10 = vld [vmem:[%s516_s1 + $0x30] sm:$0xff]  ;;  %v21_v11 = vld [vmem:[%s516_s1 + $0x38] sm:$0xff] }
   0x5   :  { %319 = vmatpush3.msra.mxu0 %v24_v1  ;;  %v203_v13 = vld [vmem:[%s517_s2 + $0x78] sm:$0xff]  ;;  %v202_v14 = vld [vmem:[%s517_s2 + $0x70] sm:$0xff]  ;;  %v201_v15 = vld [vmem:[%s517_s2 + $0x68] sm:$0xff] }
   0x6   :  { %320 = vmatprep.subr.mxu0 %v23_v3  ;;  %337 = vmatpush3.msra.mxu1 %v203_v13  ;;  %v200_v16 = vld [vmem:[%s517_s2 + $0x60] sm:$0xff]  ;;  %v199_v17 = vld [vmem:[%s517_s2 + $0x58] sm:$0xff]  ;;  %v198_v18 = vld [vmem:[%s517_s2 + $0x50] sm:$0xff] }
   0x7   :  { %321 = vmatpush3.msra.mxu0 %v23_v3  ;;  %338 = vmatprep.subr.mxu1 %v380_v12  ;;  %v197_v19 = vld [vmem:[%s517_s2 + $0x48] sm:$0xff]  ;;  %v196_v20 = vld [vmem:[%s517_s2 + $0x40] sm:$0xff]  ;;  %v195_v21 = vld [vmem:[%s517_s2 + $0x38] sm:$0xff] }
   0x8   :  { %322 = vmatprep.subr.mxu0 %v22_v4  ;;  %339 = vmatpush3.msra.mxu1 %v202_v14  ;;  %v194_v22 = vld [vmem:[%s517_s2 + $0x30] sm:$0xff]  ;;  %v193_v23 = vld [vmem:[%s517_s2 + $0x28] sm:$0xff]  ;;  %v192_v24 = vld [vmem:[%s517_s2 + $0x20] sm:$0xff] }
   0x9   :  { %323 = vmatpush3.msra.mxu0 %v22_v4  ;;  %340 = vmatprep.subr.mxu1 %v380_v12  ;;  %v191_v25 = vld [vmem:[%s517_s2 + $0x18] sm:$0xff]  ;;  %v190_v26 = vld [vmem:[%s517_s2 + $0x10] sm:$0xff]  ;;  %v189_v27 = vld [vmem:[%s517_s2 + $0x8] sm:$0xff] }
   0xa   :  { %325 = vmatmul.mubr.msk.f32.vlgmr.msra.gmra.mxu0 %vm26_vm0, %v15_v5  ;;  %341 = vmatpush3.msra.mxu1 %v201_v15  ;;  %v188_v50 = vld [vmem:[%s517_s2] sm:$0xff] }
   0xb   :  { %327 = vmatprep.mubr.msk.f32.mxu0 %vm26_vm0, %v16_v6  ;;  %342 = vmatprep.subr.mxu1 %v380_v12 }
   0xc   :  { %343 = vmatpush3.msra.mxu1 %v200_v16 }
   0xd   :  { %344 = vmatprep.subr.mxu1 %v380_v12 }
   0xe   :  { %328 = vmatmul.mubr.msk.f32.gmra.mxu0 %vm26_vm0, %v17_v7  ;;  %345 = vmatpush3.msra.mxu1 %v199_v17 }
   0xf   :  { %330 = vmatprep.mubr.msk.f32.mxu0 %vm26_vm0, %v18_v8  ;;  %346 = vmatprep.subr.mxu1 %v380_v12 }
  0x10   :  { %347 = vmatpush3.msra.mxu1 %v198_v18 }
  0x11   :  { %348 = vmatprep.subr.mxu1 %v380_v12 }
  0x12   :  { %331 = vmatmul.mubr.msk.f32.gmra.mxu0 %vm26_vm0, %v19_v9  ;;  %349 = vmatpush3.msra.mxu1 %v197_v19 }
  0x13   :  { %333 = vmatprep.mubr.msk.f32.mxu0 %vm26_vm0, %v20_v10  ;;  %350 = vmatprep.subr.mxu1 %v380_v12 }
  0x14   :  { %351 = vmatpush3.msra.mxu1 %v196_v20 }
  0x15   :  { %352 = vmatprep.subr.mxu1 %v380_v12 }
  0x16   :  { %334 = vmatmul.mubr.msk.f32.gmra.mxu0 %vm26_vm0, %v21_v11  ;;  %353 = vmatpush3.msra.mxu1 %v195_v21 }
  0x17   :  { %354 = vmatprep.subr.mxu1 %v380_v12 }
  0x18   :  { %355 = vmatpush3.msra.mxu1 %v194_v22 }
  0x19   :  { %356 = vmatprep.subr.mxu1 %v380_v12 }
  0x1a   :  { %357 = vmatpush3.msra.mxu1 %v193_v23 }
  0x1b   :  { %358 = vmatprep.subr.mxu1 %v380_v12 }
  0x1c   :  { %359 = vmatpush3.msra.mxu1 %v192_v24 }
  0x1d   :  { %360 = vmatprep.subr.mxu1 %v380_v12 }
  0x1e   :  { %361 = vmatpush3.msra.mxu1 %v191_v25 }
  0x1f   :  { %362 = vmatprep.subr.mxu1 %v380_v12 }
  0x20   :  { %363 = vmatpush3.msra.mxu1 %v190_v26 }
  0x21   :  { %364 = vmatprep.subr.mxu1 %v380_v12 }
  0x22   :  { %365 = vmatpush3.msra.mxu1 %v189_v27 }
  0x23   :  { %366 = vmatprep.subr.mxu1 %v380_v12 }
  0x24   :  { %367 = vmatpush3.msra.mxu1 %v188_v50 }
  0xca   :  { %v326_v28 = vpop.f32.mrf.mxu0 }
  0xcb   :  { %v157_v32 = vmul.f32 %v326_v28, %v326_v28 }
  0xcc   :  { %v117_v29 = vpop.f32.mrf.mxu0 }
  0xcd   :  { %v156_v30 = vmul.f32 %v117_v29, %v117_v29 }
  0xce   :  { %v329_v31 = vpop.f32.mrf.mxu0 }
  0xcf   :  { %v158_v34 = vadd.f32 %v157_v32, %v156_v30  ;;  %v161_v35 = vmul.f32 %v329_v31, %v326_v28 }
  0xd0   :  { %v127_v33 = vpop.f32.mrf.mxu0 }
  0xd1   :  { %v160_v36 = vmul.f32 %v127_v33, %v117_v29  ;;  %v159_v38 = vmul.f32 0.70710677, %v158_v34 }
  0xd2   :  { %v332_v48 = vpop.f32.mrf.mxu0 }
  0xd3   :  { %v162_v37 = vadd.f32 %v161_v35, %v160_v36 }
  0xd4   :  { %v137_v49 = vpop.f32.mrf.mxu0 }
  0xd5   :  { %v163_v39 = vmul.f32 0.70710677, %v162_v37 }
  0xd6   :  { %v335_v51 = vpop.f32.mrf.mxu0 }
  0xd7   :  { %v164_v40 = vmax.f32 %v159_v38, %v163_v39 }
  0xd8   :  { %v147_v53 = vpop.f32.mrf.mxu0 }
  0xd9   :  { %v165_v41 = vsub.f32 %v159_v38, %v164_v40  ;;  %v168_v42 = vsub.f32 %v163_v39, %v164_v40 }
  0xdb   :  { %v166_v43 = vmul.f32 1.442695, %v165_v41  ;;  %v169_v44 = vmul.f32 1.442695, %v168_v42 }
  0xdd   :  { %374 = vpow2.f32 %v166_v43 }
  0xde   :  { %376 = vpow2.f32 %v169_v44 }
  0xea   :  { %v375_v45 = vpop.eup %374 }
  0xeb   :  { %v377_v46 = vpop.eup %376 }
  0xec   :  { %v171_v47 = vadd.f32 %v377_v46, %v375_v45 }
  0xee   :  { %378 = vrcp.f32 %v171_v47 }
  0xfb   :  { %v379_v52 = vpop.eup %378 }
  0xfc   :  { %v174_v54 = vmul.f32 %v379_v52, %v375_v45  ;;  %v175_v55 = vmul.f32 %v379_v52, %v377_v46 }
  0xfe   :  { %v179_v56 = vmul.f32 %v332_v48, %v174_v54  ;;  %v176_v57 = vmul.f32 %v174_v54, %v137_v49  ;;  %v180_v58 = vmul.f32 %v335_v51, %v175_v55  ;;  %v177_v59 = vmul.f32 %v175_v55, %v147_v53 }
 0x100   :  { %v178_v60 = vadd.f32 %v177_v59, %v176_v57  ;;  %v181_v61 = vadd.f32 %v180_v58, %v179_v56 }
 0x102   :  { %183 = vrot.lane.b32.xlu0 %v181_v61, %s382_s11 }
 0x174   :  { %v184_v62 = vpop.permute.xlu0 %183 }
 0x175   :  { %v187_v63 = vsel %vm186_vm2, %v178_v60, %v184_v62 }
 0x176   :  { %369 = vmatmul.mubr.f32.vlgmr.msra.gmra.mxu1 %v187_v63 }
 0x236   :  { %v270_v0 = vpop.f32.mrf.mxu1 }
 0x237   :  { %274 = vst [vmem:[%s518_s3] sm:$0xff] %v270_v0 }
 0x238   :  { %v370_v1 = vpop.f32.mrf.mxu1 }

</bundles_post_ra>
